<compile_context>
chip_gen: v7x
topology: tpu7x:2x2x1
jax: 0.10.0
libtpu: 0.0.40
codegen_flags: <defaults>
</compile_context>

<pallas_src>
import functools

import jax
import jax.numpy as jnp
from jax.experimental import pallas as pl
from jax.experimental.pallas import tpu as pltpu

_C_PAD = 64   # packed feature rows (62 used, rows 23 & 47 are zero pad)


def _round_up(x, m):
    return ((x + m - 1) // m) * m


def _lane_fold(v):
    """(r, tn) -> (r, 128): sum 128-lane groups with static slice-adds
    (pure VPU adds, no relayout, keeps the store 128-lane dense)."""
    n = v.shape[-1]
    acc = v[:, 0:128]
    for g in range(1, n // 128):
        acc = acc + v[:, g * 128:(g + 1) * 128]
    return acc


# ----------------------------- Pallas kernel -----------------------------------
def yolo_loss_kernel(x_ref, out_ref, *, inv_s):
    f32 = jnp.float32

    # Object mask (exactly 0.0 / 1.0), shared by several terms.
    m = x_ref[22:23, :].astype(f32)                       # (1, tn)

    # ---- class prediction loss: rows 0-23 vs 24-47 (dup/pad rows cancel) -----
    dcls = x_ref[0:24, :].astype(f32) - x_ref[24:48, :].astype(f32)
    cls_lane = jnp.sum(dcls * dcls, axis=0, keepdims=True) * m

    # ---- confidences / no-object loss ----------------------------------------
    conf = x_ref[20:22, :].astype(f32)                    # (2, tn): c0, c1
    conf_sq = conf * conf
    noobj_lane = (1.0 - m) * (conf_sq[0:1, :] + conf_sq[1:2, :])

    # ---- batched two-predictor IoU (cross-multiplied comparison, no divide) --
    praw = x_ref[48:56, :].astype(f32)                    # x0,x1, y0,y1, w0,w1, h0,h1
    traw = x_ref[56:64, :].astype(f32)                    # xt,xt, yt,yt, wt,wt, ht,ht
    p_half = 0.5 * praw[4:8, :]
    t_half = 0.5 * traw[4:8, :]
    p_c = praw[0:4, :] * inv_s                            # centers, computed once
    t_c = traw[0:4, :] * inv_s
    p_lo = p_c - p_half
    p_hi = p_c + p_half
    t_lo = t_c - t_half
    t_hi = t_c + t_half
    wh = jnp.maximum(jnp.minimum(p_hi, t_hi) - jnp.maximum(p_lo, t_lo), 0.0)
    inter = wh[0:2, :] * wh[2:4, :]                       # (2, tn): i0, i1
    p_area = praw[4:6, :] * praw[6:8, :]                  # (2, tn): w0*h0, w1*h1
    t_area = traw[4:5, :] * traw[6:7, :]                  # (1, tn): wt*ht
    union = p_area + t_area - inter                       # (2, tn)
    # iou1 > iou0  <=>  i1*u0 > i0*u1 (unions >= 0); ties pick predictor 0,
    # matching torch.max; no NaN/Inf on degenerate (zero-area) boxes.
    pick1 = inter[1:2, :] * union[0:1, :] > inter[0:1, :] * union[1:2, :]

    # ---- regression loss: both predictors batched, then selected --------------
    d_pos = praw[0:4, :] - traw[0:4, :]                   # x0-xt, x1-xt, y0-yt, y1-yt
    d_pos = d_pos * d_pos
    wm_p = praw[4:8, :] * m                               # mask *before* sqrt -> no NaN
    wm_t = traw[4:8, :] * m
    d_wh = jnp.sqrt(wm_p) - jnp.sqrt(wm_t)
    d_wh = d_wh * d_wh
    terms = d_pos + d_wh                                  # (4, tn)
    reg01 = terms[0:2, :] + terms[2:4, :]                 # (2, tn): reg_0, reg_1
    reg_lane = jnp.where(pick1, reg01[1:2, :], reg01[0:1, :]) * m

    # ---- containing-object confidence loss ------------------------------------
    c_term = (conf - 1.0) ** 2                            # (2, tn)
    conf_lane = jnp.where(pick1, c_term[1:2, :], c_term[0:1, :]) * m

    # ---- lane-fold to 128 lanes; one tiny (8,128) partial per block -----------
    out_ref[0:1, :] = _lane_fold(cls_lane)
    out_ref[1:2, :] = _lane_fold(noobj_lane)
    out_ref[2:3, :] = _lane_fold(reg_lane)
    out_ref[3:4, :] = _lane_fold(conf_lane)
    out_ref[4:8, :] = jnp.zeros((4, 128), jnp.float32)


# ----------------------------- wrapper ------------------------------------------
def _pack_slab(pred, tbox, tcls, mask_f, m_pad):
    """Build the (64, m_pad) feature-major slab (row layout documented above)."""
    M = pred.shape[0]
    z1 = jnp.zeros((M, 1), jnp.float32)
    c0, c1 = pred[:, 4:5], pred[:, 9:10]
    cols = [
        pred[:, 10:30],                                   # rows  0-19: pred classes
        c0, c1, mask_f, z1,                               # rows 20-23
        tcls,                                             # rows 24-43: target classes
        c0, c1, mask_f, z1,                               # rows 44-47 (cancel in diff)
        pred[:, 0:1], pred[:, 5:6],                       # rows 48-49: x0, x1
        pred[:, 1:2], pred[:, 6:7],                       # rows 50-51: y0, y1
        pred[:, 2:3], pred[:, 7:8],                       # rows 52-53: w0, w1
        pred[:, 3:4], pred[:, 8:9],                       # rows 54-55: h0, h1
        tbox[:, 0:1], tbox[:, 0:1],                       # rows 56-57: xt, xt
        tbox[:, 1:2], tbox[:, 1:2],                       # rows 58-59: yt, yt
        tbox[:, 2:3], tbox[:, 2:3],                       # rows 60-61: wt, wt
        tbox[:, 3:4], tbox[:, 3:4],                       # rows 62-63: ht, ht
    ]
    feat = jnp.concatenate(cols, axis=1)                  # (M, 64)
    return jnp.pad(feat, ((0, m_pad - M), (0, 0))).T      # (64, m_pad), zero-padded cells


def _choose_tile(M, block_n):
    m128 = _round_up(M, 128)
    if m128 <= 128:
        tn = 128
    elif m128 < 2 * block_n:
        # Split into >=2 blocks so both v7x TensorCores get work.
        tn = min(block_n, _round_up((m128 + 1) // 2, 128))
    else:
        tn = block_n
    m_pad = _round_up(m128, tn)
    return tn, m_pad, m_pad // tn


@functools.partial(jax.jit,
                   static_argnames=("S", "B", "l_coord", "l_noobj", "block_n"))
def yolo_loss(pred_tensor, target_boxes, target_cls, has_object_map,
              *, S, B, l_coord, l_noobj, block_n=8192):
    """pred_tensor: (N,S,S,B*5+20); target_boxes: (N,S,S,4);
    target_cls: (N,S,S,20); has_object_map: (N,S,S) bool."""
    assert B == 2, "kernel specialized for B=2 (as in the reference YOLO loss)"
    assert block_n % 128 == 0
    N = pred_tensor.shape[0]
    M = N * S * S

    pred = pred_tensor.reshape(M, 5 * B + 20).astype(jnp.float32)
    tbox = target_boxes.reshape(M, 4).astype(jnp.float32)
    tcls = target_cls.reshape(M, 20).astype(jnp.float32)
    mask_f = has_object_map.reshape(M, 1).astype(jnp.float32)

    tn, m_pad, num_blocks = _choose_tile(M, block_n)
    slab = _pack_slab(pred, tbox, tcls, mask_f, m_pad)    # (64, m_pad)

    in_block_bytes = _C_PAD * tn * 4
    vmem_limit = int(min(100 * 1024 * 1024,
                         max(16 * 1024 * 1024, 2 * in_block_bytes + (2 << 20))))

    partials = pl.pallas_call(
        functools.partial(yolo_loss_kernel, inv_s=1.0 / float(S)),
        out_shape=jax.ShapeDtypeStruct((num_blocks * 8, 128), jnp.float32),
        grid=(num_blocks,),
        in_specs=[pl.BlockSpec((_C_PAD, tn), lambda i: (0, i))],
        out_specs=pl.BlockSpec((8, 128), lambda i: (i, 0)),
        compiler_params=pltpu.CompilerParams(
            dimension_semantics=("parallel",),            # independent blocks
            vmem_limit_bytes=vmem_limit,
            allow_input_fusion=[True]),                   # fuse the pack into the input
    )(slab)

    # Tiny final reduce over blocks + 128 lanes (rows 0-3 of each partial).
    sums = jnp.sum(partials.reshape(num_blocks, 8, 128)[:, 0:4, :], axis=(0, 2))
    cls_loss = sums[0] / N
    no_obj_loss = l_noobj * sums[1] / N
    reg_loss = l_coord * sums[2] / N
    containing_obj_loss = sums[3] / N
    total = reg_loss + containing_obj_loss + no_obj_loss + cls_loss
    return dict(total_loss=total,
                reg_loss=reg_loss,
                containing_obj_loss=containing_obj_loss,
                no_obj_loss=no_obj_loss,
                cls_loss=cls_loss)


# ----------------------------- pure-JAX reference --------------------------------
def _xywh2xyxy_cols(x, y, w, h, S):
    return x / S - 0.5 * w, y / S - 0.5 * h, x / S + 0.5 * w, y / S + 0.5 * h


def _iou_cols(p, t):
    px1, py1, px2, py2 = p
    tx1, ty1, tx2, ty2 = t
    iw = jnp.maximum(jnp.minimum(px2, tx2) - jnp.maximum(px1, tx1), 0.0)
    ih = jnp.maximum(jnp.minimum(py2, ty2) - jnp.maximum(py1, ty1), 0.0)
    inter = iw * ih
    a1 = (px2 - px1) * (py2 - py1)
    a2 = (tx2 - tx1) * (ty2 - ty1)
    return inter / (a1 + a2 - inter)


def yolo_loss_ref(pred_tensor, target_boxes, target_cls, has_object_map,
                  *, S, B, l_coord, l_noobj):
    N = pred_tensor.shape[0]
    M = N * S * S
    p = pred_tensor.reshape(M, 5 * B + 20).astype(jnp.float32)
    box0, box1, pcls = p[:, 0:5], p[:, 5:10], p[:, 10:30]
    tbox = target_boxes.reshape(M, 4).astype(jnp.float32)
    tcls = target_cls.reshape(M, 20).astype(jnp.float32)
    m = has_object_map.reshape(M, 1).astype(jnp.float32)
    has_obj = m > 0.0

    cls_sum = jnp.sum(((pcls - tcls) ** 2) * m)
    noobj_sum = jnp.sum((1.0 - m) * (box0[:, 4:5] ** 2 + box1[:, 4:5] ** 2))

    t_xyxy = _xywh2xyxy_cols(tbox[:, 0:1], tbox[:, 1:2], tbox[:, 2:3], tbox[:, 3:4], S)
    iou0 = _iou_cols(_xywh2xyxy_cols(box0[:, 0:1], box0[:, 1:2], box0[:, 2:3], box0[:, 3:4], S), t_xyxy)
    iou1 = _iou_cols(_xywh2xyxy_cols(box1[:, 0:1], box1[:, 1:2], box1[:, 2:3], box1[:, 3:4], S), t_xyxy)
    best = jnp.where(iou1 > iou0, box1, box0)

    bw = jnp.where(has_obj, best[:, 2:3], 0.0)
    bh = jnp.where(has_obj, best[:, 3:4], 0.0)
    tw = jnp.where(has_obj, tbox[:, 2:3], 0.0)
    th = jnp.where(has_obj, tbox[:, 3:4], 0.0)
    reg = ((best[:, 0:1] - tbox[:, 0:1]) ** 2 + (best[:, 1:2] - tbox[:, 1:2]) ** 2
           + (jnp.sqrt(bw) - jnp.sqrt(tw)) ** 2 + (jnp.sqrt(bh) - jnp.sqrt(th)) ** 2)
    reg_sum = jnp.sum(jnp.where(has_obj, reg, 0.0))
    conf_sum = jnp.sum(jnp.where(has_obj, (best[:, 4:5] - 1.0) ** 2, 0.0))

    cls_loss = cls_sum / N
    no_obj_loss = l_noobj * noobj_sum / N
    reg_loss = l_coord * reg_sum / N
    containing_obj_loss = conf_sum / N
    total = reg_loss + containing_obj_loss + no_obj_loss + cls_loss
    return dict(total_loss=total, reg_loss=reg_loss,
                containing_obj_loss=containing_obj_loss,
                no_obj_loss=no_obj_loss, cls_loss=cls_loss)


# ----------------------------- main ----------------------------------------------
if __name__ == "__main__":
    B = 2
    l_coord, l_noobj = 5.0, 0.5
    key = jax.random.PRNGKey(0)

    # (N, S, block_n): second/third cases exercise lane padding + multi-block grids.
    for N, S, block_n in [(2, 4, 8192), (2, 14, 8192), (3, 7, 256)]:
        key, k1, k2, k3, k4 = jax.random.split(key, 5)
        # Keep box params strictly positive so sqrt(w), sqrt(h) are well-defined
        # on occupied cells (same requirement the PyTorch module has).
        pred_tensor = jax.random.uniform(k1, (N, S, S, B * 5 + 20), jnp.float32,
                                         minval=0.05, maxval=0.95)
        target_boxes = jax.random.uniform(k2, (N, S, S, 4), jnp.float32,
                                          minval=0.05, maxval=0.95)
        target_cls = jax.random.uniform(k3, (N, S, S, 20), jnp.float32)
        has_object_map = jax.random.uniform(k4, (N, S, S)) > 0.5

        out = yolo_loss(pred_tensor, target_boxes, target_cls, has_object_map,
                        S=S, B=B, l_coord=l_coord, l_noobj=l_noobj,
                        block_n=block_n)
        out = jax.tree_util.tree_map(jax.block_until_ready, out)

        ref = yolo_loss_ref(pred_tensor, target_boxes, target_cls, has_object_map,
                            S=S, B=B, l_coord=l_coord, l_noobj=l_noobj)
        for k in out:
            assert jnp.allclose(out[k], ref[k], rtol=1e-5, atol=1e-5), \
                (N, S, k, out[k], ref[k])

    # TODO(synk): forward-only; sqrt(0) masking is not sufficient for a backward
    # pass (infinite derivative) — a custom VJP would be needed for training.
    print("KERNEL_OK")
</pallas_src>

<mosaic_0001>
module attributes {stable_mosaic.version = 11 : i64} {
  func.func @yolo_loss_kernel(%arg0: i32, %arg1: memref<64x128xf32, #tpu.memory_space<vmem>>, %arg2: memref<8x128xf32, #tpu.memory_space<vmem>>) attributes {dimension_semantics = [#tpu.dimension_semantics<parallel>], iteration_bounds = array<i64: 1>, scalar_prefetch = 0 : i64, scratch_operands = 0 : i64, tpu.core_type = #tpu.core_type<tc>, window_params = [{transform_indices = @transform_0, window_bounds = array<i64: 64, 128>}, {transform_indices = @transform_1, window_bounds = array<i64: 8, 128>}]} {
    %c22 = arith.constant 22 : index
    %c0 = arith.constant 0 : index
    %0 = vector.load %arg1[%c22, %c0] : memref<64x128xf32, #tpu.memory_space<vmem>>, vector<1x128xf32>
    %c0_0 = arith.constant 0 : index
    %c0_1 = arith.constant 0 : index
    %1 = vector.load %arg1[%c0_0, %c0_1] : memref<64x128xf32, #tpu.memory_space<vmem>>, vector<24x128xf32>
    %c24 = arith.constant 24 : index
    %c0_2 = arith.constant 0 : index
    %2 = vector.load %arg1[%c24, %c0_2] : memref<64x128xf32, #tpu.memory_space<vmem>>, vector<24x128xf32>
    %3 = arith.subf %1, %2 : vector<24x128xf32>
    %4 = arith.mulf %3, %3 : vector<24x128xf32>
    %cst = arith.constant dense<0.000000e+00> : vector<128xf32>
    %5 = vector.multi_reduction <add>, %4, %cst [0] : vector<24x128xf32> to vector<128xf32>
    %6 = vector.shape_cast %5 : vector<128xf32> to vector<1x128xf32>
    %7 = arith.mulf %6, %0 : vector<1x128xf32>
    %c20 = arith.constant 20 : index
    %c0_3 = arith.constant 0 : index
    %8 = vector.load %arg1[%c20, %c0_3] : memref<64x128xf32, #tpu.memory_space<vmem>>, vector<2x128xf32>
    %9 = arith.mulf %8, %8 : vector<2x128xf32>
    %cst_4 = arith.constant 1.000000e+00 : f32
    %10 = vector.broadcast %cst_4 : f32 to vector<1x128xf32>
    %11 = arith.subf %10, %0 : vector<1x128xf32>
    %12 = vector.extract_strided_slice %9 {offsets = [0, 0], sizes = [1, 128], strides = [1, 1]} : vector<2x128xf32> to vector<1x128xf32>
    %13 = vector.extract_strided_slice %9 {offsets = [1, 0], sizes = [1, 128], strides = [1, 1]} : vector<2x128xf32> to vector<1x128xf32>
    %14 = arith.addf %12, %13 : vector<1x128xf32>
    %15 = arith.mulf %11, %14 : vector<1x128xf32>
    %c48 = arith.constant 48 : index
    %c0_5 = arith.constant 0 : index
    %16 = vector.load %arg1[%c48, %c0_5] : memref<64x128xf32, #tpu.memory_space<vmem>>, vector<8x128xf32>
    %c56 = arith.constant 56 : index
    %c0_6 = arith.constant 0 : index
    %17 = vector.load %arg1[%c56, %c0_6] : memref<64x128xf32, #tpu.memory_space<vmem>>, vector<8x128xf32>
    %18 = vector.extract_strided_slice %16 {offsets = [4, 0], sizes = [4, 128], strides = [1, 1]} : vector<8x128xf32> to vector<4x128xf32>
    %cst_7 = arith.constant 5.000000e-01 : f32
    %19 = vector.broadcast %cst_7 : f32 to vector<4x128xf32>
    %20 = arith.mulf %19, %18 : vector<4x128xf32>
    %21 = vector.extract_strided_slice %17 {offsets = [4, 0], sizes = [4, 128], strides = [1, 1]} : vector<8x128xf32> to vector<4x128xf32>
    %cst_8 = arith.constant 5.000000e-01 : f32
    %22 = vector.broadcast %cst_8 : f32 to vector<4x128xf32>
    %23 = arith.mulf %22, %21 : vector<4x128xf32>
    %24 = vector.extract_strided_slice %16 {offsets = [0, 0], sizes = [4, 128], strides = [1, 1]} : vector<8x128xf32> to vector<4x128xf32>
    %cst_9 = arith.constant 2.500000e-01 : f32
    %25 = vector.broadcast %cst_9 : f32 to vector<4x128xf32>
    %26 = arith.mulf %24, %25 : vector<4x128xf32>
    %27 = vector.extract_strided_slice %17 {offsets = [0, 0], sizes = [4, 128], strides = [1, 1]} : vector<8x128xf32> to vector<4x128xf32>
    %cst_10 = arith.constant 2.500000e-01 : f32
    %28 = vector.broadcast %cst_10 : f32 to vector<4x128xf32>
    %29 = arith.mulf %27, %28 : vector<4x128xf32>
    %30 = arith.subf %26, %20 : vector<4x128xf32>
    %31 = arith.addf %26, %20 : vector<4x128xf32>
    %32 = arith.subf %29, %23 : vector<4x128xf32>
    %33 = arith.addf %29, %23 : vector<4x128xf32>
    %34 = arith.minimumf %31, %33 : vector<4x128xf32>
    %35 = arith.maximumf %30, %32 : vector<4x128xf32>
    %36 = arith.subf %34, %35 : vector<4x128xf32>
    %cst_11 = arith.constant 0.000000e+00 : f32
    %37 = vector.broadcast %cst_11 : f32 to vector<4x128xf32>
    %38 = arith.maximumf %36, %37 : vector<4x128xf32>
    %39 = vector.extract_strided_slice %38 {offsets = [0, 0], sizes = [2, 128], strides = [1, 1]} : vector<4x128xf32> to vector<2x128xf32>
    %40 = vector.extract_strided_slice %38 {offsets = [2, 0], sizes = [2, 128], strides = [1, 1]} : vector<4x128xf32> to vector<2x128xf32>
    %41 = arith.mulf %39, %40 : vector<2x128xf32>
    %42 = vector.extract_strided_slice %16 {offsets = [4, 0], sizes = [2, 128], strides = [1, 1]} : vector<8x128xf32> to vector<2x128xf32>
    %43 = vector.extract_strided_slice %16 {offsets = [6, 0], sizes = [2, 128], strides = [1, 1]} : vector<8x128xf32> to vector<2x128xf32>
    %44 = arith.mulf %42, %43 : vector<2x128xf32>
    %45 = vector.extract_strided_slice %17 {offsets = [4, 0], sizes = [1, 128], strides = [1, 1]} : vector<8x128xf32> to vector<1x128xf32>
    %46 = vector.extract_strided_slice %17 {offsets = [6, 0], sizes = [1, 128], strides = [1, 1]} : vector<8x128xf32> to vector<1x128xf32>
    %47 = arith.mulf %45, %46 : vector<1x128xf32>
    %48 = vector.broadcast %47 : vector<1x128xf32> to vector<2x128xf32>
    %49 = arith.addf %44, %48 : vector<2x128xf32>
    %50 = arith.subf %49, %41 : vector<2x128xf32>
    %51 = vector.extract_strided_slice %41 {offsets = [1, 0], sizes = [1, 128], strides = [1, 1]} : vector<2x128xf32> to vector<1x128xf32>
    %52 = vector.extract_strided_slice %50 {offsets = [0, 0], sizes = [1, 128], strides = [1, 1]} : vector<2x128xf32> to vector<1x128xf32>
    %53 = arith.mulf %51, %52 : vector<1x128xf32>
    %54 = vector.extract_strided_slice %41 {offsets = [0, 0], sizes = [1, 128], strides = [1, 1]} : vector<2x128xf32> to vector<1x128xf32>
    %55 = vector.extract_strided_slice %50 {offsets = [1, 0], sizes = [1, 128], strides = [1, 1]} : vector<2x128xf32> to vector<1x128xf32>
    %56 = arith.mulf %54, %55 : vector<1x128xf32>
    %57 = arith.cmpf ogt, %53, %56 : vector<1x128xf32>
    %58 = vector.extract_strided_slice %16 {offsets = [0, 0], sizes = [4, 128], strides = [1, 1]} : vector<8x128xf32> to vector<4x128xf32>
    %59 = vector.extract_strided_slice %17 {offsets = [0, 0], sizes = [4, 128], strides = [1, 1]} : vector<8x128xf32> to vector<4x128xf32>
    %60 = arith.subf %58, %59 : vector<4x128xf32>
    %61 = arith.mulf %60, %60 : vector<4x128xf32>
    %62 = vector.extract_strided_slice %16 {offsets = [4, 0], sizes = [4, 128], strides = [1, 1]} : vector<8x128xf32> to vector<4x128xf32>
    %63 = vector.broadcast %0 : vector<1x128xf32> to vector<4x128xf32>
    %64 = arith.mulf %62, %63 : vector<4x128xf32>
    %65 = vector.extract_strided_slice %17 {offsets = [4, 0], sizes = [4, 128], strides = [1, 1]} : vector<8x128xf32> to vector<4x128xf32>
    %66 = vector.broadcast %0 : vector<1x128xf32> to vector<4x128xf32>
    %67 = arith.mulf %65, %66 : vector<4x128xf32>
    %68 = math.sqrt %64 : vector<4x128xf32>
    %69 = math.sqrt %67 : vector<4x128xf32>
    %70 = arith.subf %68, %69 : vector<4x128xf32>
    %71 = arith.mulf %70, %70 : vector<4x128xf32>
    %72 = arith.addf %61, %71 : vector<4x128xf32>
    %73 = vector.extract_strided_slice %72 {offsets = [0, 0], sizes = [2, 128], strides = [1, 1]} : vector<4x128xf32> to vector<2x128xf32>
    %74 = vector.extract_strided_slice %72 {offsets = [2, 0], sizes = [2, 128], strides = [1, 1]} : vector<4x128xf32> to vector<2x128xf32>
    %75 = arith.addf %73, %74 : vector<2x128xf32>
    %76 = vector.extract_strided_slice %75 {offsets = [1, 0], sizes = [1, 128], strides = [1, 1]} : vector<2x128xf32> to vector<1x128xf32>
    %77 = vector.extract_strided_slice %75 {offsets = [0, 0], sizes = [1, 128], strides = [1, 1]} : vector<2x128xf32> to vector<1x128xf32>
    %78 = arith.select %57, %76, %77 : vector<1x128xi1>, vector<1x128xf32>
    %79 = arith.mulf %78, %0 : vector<1x128xf32>
    %cst_12 = arith.constant 1.000000e+00 : f32
    %80 = vector.broadcast %cst_12 : f32 to vector<2x128xf32>
    %81 = arith.subf %8, %80 : vector<2x128xf32>
    %82 = arith.mulf %81, %81 : vector<2x128xf32>
    %83 = vector.extract_strided_slice %82 {offsets = [1, 0], sizes = [1, 128], strides = [1, 1]} : vector<2x128xf32> to vector<1x128xf32>
    %84 = vector.extract_strided_slice %82 {offsets = [0, 0], sizes = [1, 128], strides = [1, 1]} : vector<2x128xf32> to vector<1x128xf32>
    %85 = arith.select %57, %83, %84 : vector<1x128xi1>, vector<1x128xf32>
    %86 = arith.mulf %85, %0 : vector<1x128xf32>
    %c0_13 = arith.constant 0 : index
    %c0_14 = arith.constant 0 : index
    %87 = vector.load %arg2[%c0_13, %c0_14] : memref<8x128xf32, #tpu.memory_space<vmem>>, vector<1x128xf32>
    tpu.vector_store %arg2[%c0_13, %c0_14], %7 {strides = array<i32>} : memref<8x128xf32, #tpu.memory_space<vmem>>, vector<1x128xf32>,
    %c1 = arith.constant 1 : index
    %c0_15 = arith.constant 0 : index
    %88 = vector.load %arg2[%c1, %c0_15] : memref<8x128xf32, #tpu.memory_space<vmem>>, vector<1x128xf32>
    tpu.vector_store %arg2[%c1, %c0_15], %15 {strides = array<i32>} : memref<8x128xf32, #tpu.memory_space<vmem>>, vector<1x128xf32>,
    %c2 = arith.constant 2 : index
    %c0_16 = arith.constant 0 : index
    %89 = vector.load %arg2[%c2, %c0_16] : memref<8x128xf32, #tpu.memory_space<vmem>>, vector<1x128xf32>
    tpu.vector_store %arg2[%c2, %c0_16], %79 {strides = array<i32>} : memref<8x128xf32, #tpu.memory_space<vmem>>, vector<1x128xf32>,
    %c3 = arith.constant 3 : index
    %c0_17 = arith.constant 0 : index
    %90 = vector.load %arg2[%c3, %c0_17] : memref<8x128xf32, #tpu.memory_space<vmem>>, vector<1x128xf32>
    tpu.vector_store %arg2[%c3, %c0_17], %86 {strides = array<i32>} : memref<8x128xf32, #tpu.memory_space<vmem>>, vector<1x128xf32>,
    %cst_18 = arith.constant 0.000000e+00 : f32
    %91 = vector.broadcast %cst_18 : f32 to vector<4x128xf32>
    %c4 = arith.constant 4 : index
    %c0_19 = arith.constant 0 : index
    %92 = vector.load %arg2[%c4, %c0_19] : memref<8x128xf32, #tpu.memory_space<vmem>>, vector<4x128xf32>
    tpu.vector_store %arg2[%c4, %c0_19], %91 {strides = array<i32>} : memref<8x128xf32, #tpu.memory_space<vmem>>, vector<4x128xf32>,
    return
  }
  func.func @transform_0(%arg0: i32) -> (i32, i32) {
    %c0_i32 = arith.constant 0 : i32
    %c0_i32_0 = arith.constant 0 : i32
    return %c0_i32, %arg0 : i32, i32
  }
  func.func @transform_1(%arg0: i32) -> (i32, i32) {
    %c0_i32 = arith.constant 0 : i32
    %c0_i32_0 = arith.constant 0 : i32
    return %arg0, %c0_i32 : i32, i32
  }
}

</mosaic_0001>

<bundles_post_ra>
// kernel: yolo_loss.2
= control target key start
LH: loop header
LB: loop body
LE: loop exit
PB: predicated region body
PF: predicated region fallthrough
CT: control target
= control target key end

     0   :  { %s320_s0 = inlined_call_operand.vmem [shape: f32[32,64], index: 0, kind: input, shape index: {}]   ;;  %s321_s1 = inlined_call_operand.<no memory space> [shape: f32[], index: 1, kind: input, shape index: {}]   ;;  %s322_s2 = inlined_call_operand.vmem [shape: f32[8,128], index: 2, kind: output, shape index: {}]  }
   0x1   :  { %v7_v0 = vstv %s321_s1 }
   0x2   :  { %v11_v1 = vlaneseq  ;;  %v10_v2 = vld [vmem:[%s320_s0] sm:$0xff]  ;;  %v226_v3 = vld [vmem:[%s320_s0 + $0x8] sm:$0xff]  ;;  %v239_v4 = vmov 0.0   ;;  %v227_v6 = vld [vmem:[%s320_s0 + $0x10] sm:$0xff] }
   0x3   :  { %221 = vst [vmem:[%s322_s2 + $0x4] sm:$0xf] %v239_v4  ;;  %v228_v7 = vld [vmem:[%s320_s0 + $0x18] sm:$0xff]  ;;  %v229_v8 = vld [vmem:[%s320_s0 + $0x20] sm:$0xff]  ;;  %v230_v9 = vld [vmem:[%s320_s0 + $0x28] sm:$0xff] }
   0x4   :  { %v12_v5 = vand.u32 127, %v11_v1  ;;  %v231_v10 = vld [vmem:[%s320_s0 + $0x30] sm:$0xff]  ;;  %v232_v11 = vld [vmem:[%s320_s0 + $0x38] sm:$0xff]  ;;  %v151_v12 = vshrl.u32 %v11_v1, 7 }
   0x6   :  { %vm14_vm0 = vcmp.lt.s32.totalorder %v12_v5, 32  ;;  %v174_v37 = vsub.s32 0, %v151_v12  ;;  %v152_v44 = vsub.s32 4, %v151_v12 }
   0x7   :  { %v15_v13 = vsel %vm14_vm0, %v10_v2, %v7_v0  ;;  %v24_v14 = vsel %vm14_vm0, %v226_v3, %v7_v0  ;;  %v34_v15 = vsel %vm14_vm0, %v227_v6, %v7_v0  ;;  %v44_v16 = vsel %vm14_vm0, %v228_v7, %v7_v0 }
   0x8   :  { %37 = vst [vmem:[#allocation7 + $0x10] sm:$0xff] %v34_v15  ;;  %v54_v17 = vsel %vm14_vm0, %v229_v8, %v7_v0  ;;  %v64_v18 = vsel %vm14_vm0, %v230_v9, %v7_v0  ;;  %v285_v19 = vsel %vm14_vm0, %v231_v10, %v7_v0  ;;  %v287_v20 = vsel %vm14_vm0, %v232_v11, %v7_v0 }
   0x9   :  { %v95_v21 = vsub.f32 %v15_v13, %v44_v16  ;;  %v96_v22 = vsub.f32 %v24_v14, %v54_v17  ;;  %v97_v23 = vsub.f32 %v34_v15, %v64_v18  ;;  %v120_v24 = vmul.f32 0.5, %v285_v19 }
   0xa   :  { %v121_v25 = vmul.f32 0.5, %v287_v20  ;;  %v122_v26 = vmul.f32 0.25, %v285_v19  ;;  %v123_v27 = vmul.f32 0.25, %v287_v20  ;;  %v147_v33 = vrot.slane %v287_v20, 2 }
   0xb   :  { %v98_v28 = vmul.f32 %v95_v21, %v95_v21  ;;  %v99_v29 = vmul.f32 %v96_v22, %v96_v22  ;;  %v100_v30 = vmul.f32 %v97_v23, %v97_v23  ;;  %v125_v31 = vrot.slane %v120_v24, 4 }
   0xc   :  { %v130_v32 = vrot.slane %v121_v25, 4  ;;  %v143_v43 = vrot.slane %v285_v19, 2  ;;  %v149_v48 = vmul.f32 %v147_v33, %v287_v20 }
   0xd   :  { %v101_v34 = vadd.f32 %v99_v29, %v98_v28  ;;  %v127_v35 = vsub.f32 %v122_v26, %v125_v31  ;;  %v128_v36 = vadd.f32 %v125_v31, %v122_v26  ;;  %v170_v26 = vsub.f32 %v285_v19, %v287_v20 }
   0xe   :  { %v132_v38 = vsub.f32 %v123_v27, %v130_v32  ;;  %v133_v39 = vadd.f32 %v130_v32, %v123_v27  ;;  %v145_v59 = vmul.f32 %v143_v43, %v285_v19  ;;  %v153_v60 = vrot.slane %v149_v48, %v152_v44 }
   0xf   :  { %v294_v40 = vld [vmem:[#allocation7 + $0x16] sm:$0x1]  ;;  %v102_v41 = vadd.f32 %v101_v34, %v100_v30  ;;  %v110_v42 = vld [vmem:[#allocation7 + $0x14] sm:$0x3]  ;;  %v171_v33 = vmul.f32 %v170_v26, %v170_v26 }
  0x10   :  { %v111_v45 = vmul.f32 %v110_v42, %v110_v42  ;;  %v134_v46 = vmin.f32 %v128_v36, %v133_v39  ;;  %v135_v47 = vmax.f32 %v127_v35, %v132_v38  ;;  %v175_v50 = vrot.slane %v294_v40, %v174_v37 }
  0x11   :  { %v103_v49 = vrot.slane %v102_v41, 4  ;;  %v112_v51 = vsub.f32 1.0, %v294_v40  ;;  %v154_v2 = vadd.f32 %v153_v60, %v145_v59  ;;  %v233_v4 = vadd.f32 -1.0, %v110_v42 }
  0x12   :  { %v114_v52 = vrot.slane %v111_v45, 1  ;;  %v136_v53 = vsub.f32 %v134_v46, %v135_v47  ;;  %v176_v55 = vmul.f32 %v175_v50, %v285_v19  ;;  %v177_v56 = vmul.f32 %v175_v50, %v287_v20 }
  0x13   :  { %v104_v54 = vadd.f32 %v103_v49, %v102_v41  ;;  %v211_v9 = vmul.f32 %v233_v4, %v233_v4  ;;  %v207_v25 = vrot.slane %v294_v40, 7 }
  0x14   :  { %v116_v57 = vadd.f32 %v114_v52, %v111_v45  ;;  %v137_v58 = vmax.f32 %v136_v53, 0.0  ;;  %235 = vrsqrt.f32 %v176_v55  ;;  %vm180_vm1 = vcmp.eq.f32.partialorder %v176_v55, inf }
  0x15   :  { %v105_v61 = vrot.slane %v104_v54, 2  ;;  %237 = vrsqrt.f32 %v177_v56  ;;  %vm182_vm2 = vcmp.eq.f32.partialorder %v176_v55, 0.0  ;;  %v183_v13 = vand.u32 2147483648, %v176_v55 }
  0x16   :  { %v117_v62 = vmul.f32 %v116_v57, %v112_v51  ;;  %v139_v63 = vrot.slane %v137_v58, 2  ;;  %vm187_vm3 = vcmp.eq.f32.partialorder %v177_v56, inf  ;;  %v190_v18 = vand.u32 2147483648, %v177_v56 }
  0x17   :  { %v106_v0 = vadd.f32 %v105_v61, %v104_v54  ;;  %vm189_vm4 = vcmp.eq.f32.partialorder %v177_v56, 0.0  ;;  %v213_v22 = vrot.slane %v211_v9, 7 }
  0x18   :  { %v141_v1 = vmul.f32 %v139_v63, %v137_v58  ;;  %218 = vst [vmem:[%s322_s2 + $0x1] sm:$0x1] %v117_v62 }
  0x19   :  { %v107_v3 = vrot.slane %v106_v0, 1 }
  0x1a   :  { %v156_v5 = vrot.slane %v141_v1, 4 }
  0x1b   :  { %v108_v6 = vadd.f32 %v107_v3, %v106_v0 }
  0x1c   :  { %v158_v7 = vsub.f32 %v154_v2, %v156_v5 }
  0x1d   :  { %v109_v8 = vmul.f32 %v108_v6, %v294_v40 }
  0x1e   :  { %v160_v10 = vrot.slane %v158_v7, 3  ;;  %v163_v11 = vrot.slane %v158_v7, 5  ;;  %v236_v12 = vpop.eup %235 }
  0x1f   :  { %217 = vst [vmem:[%s322_s2] sm:$0x1] %v109_v8  ;;  %v238_v14 = vpop.eup %237  ;;  %v179_v17 = vmul.f32 %v236_v12, %v176_v55 }
  0x20   :  { %v162_v15 = vmul.f32 %v160_v10, %v141_v1  ;;  %v165_v16 = vmul.f32 %v163_v11, %v141_v1  ;;  %v186_v21 = vmul.f32 %v238_v14, %v177_v56 }
  0x21   :  { %v181_v24 = vsel %vm180_vm1, %v176_v55, %v179_v17 }
  0x22   :  { %v167_v23 = vrot.slane %v165_v16, 7  ;;  %v184_v27 = vsel %vm182_vm2, %v183_v13, %v181_v24  ;;  %v188_v28 = vsel %vm187_vm3, %v177_v56, %v186_v21 }
  0x23   :  { %v191_v29 = vsel %vm189_vm4, %v190_v18, %v188_v28 }
  0x24   :  { %vm169_vm5 = vcmp.gt.f32.partialorder %v162_v15, %v167_v23  ;;  %v192_v30 = vsub.f32 %v184_v27, %v191_v29 }
  0x25   :  { %v215_v31 = vsel %vm169_vm5, %v211_v9, %v213_v22 }
  0x26   :  { %v216_v32 = vmul.f32 %v215_v31, %v207_v25  ;;  %v193_v34 = vmul.f32 %v192_v30, %v192_v30 }
  0x28   :  { %220 = vst [vmem:[%s322_s2 + $0x2] sm:$0x2] %v216_v32  ;;  %v195_v35 = vrot.slane %v193_v34, 4 }
  0x2a   :  { %v197_v36 = vadd.f32 %v195_v35, %v171_v33 }
  0x2c   :  { %v199_v37 = vrot.slane %v197_v36, 2 }
  0x2e   :  { %v201_v38 = vadd.f32 %v199_v37, %v197_v36 }
  0x30   :  { %v203_v39 = vrot.slane %v201_v38, 7 }
  0x32   :  { %v205_v19 = vsel %vm169_vm5, %v201_v38, %v203_v39 }
  0x33   :  { %v209_v20 = vmul.f32 %v207_v25, %v205_v19 }
  0x35   :  { %219 = vst [vmem:[%s322_s2 + $0x1] sm:$0x2] %v209_v20 }

</bundles_post_ra>
